<compile_context>
chip_gen: v5e
topology: v5e:2x2
jax: 0.10.0
libtpu: 0.0.40
codegen_flags: <defaults>
</compile_context>

<pallas_src>
import functools

import jax
import jax.numpy as jnp
from jax.experimental import pallas as pl
from jax.experimental.pallas import tpu as pltpu


def _round_up(v, m):
    return (v + m - 1) // m * m


def _mlp_kernel(x_ref, w1_ref, b1_ref, w2_ref, b2_ref, w3_ref, b3_ref,
                w4_ref, b4_ref, o_ref):
    x = x_ref[...]                       # (tm, d0)
    w1 = w1_ref[...]                     # (d0, h1)
    b1 = b1_ref[...]                     # (1, h1)
    d0 = x.shape[-1]

    if d0 <= 8:
        # Tiny contraction dim: broadcast FMAs on the VPU instead of an MXU pass.
        z1 = x[:, 0:1] * w1[0:1, :] + b1
        for j in range(1, d0):
            z1 = z1 + x[:, j:j + 1] * w1[j:j + 1, :]
    else:
        z1 = jnp.dot(x, w1, preferred_element_type=jnp.float32) + b1

    a = jnp.tanh(z1)
    a = jnp.tanh(
        jnp.dot(a, w2_ref[...], preferred_element_type=jnp.float32)
        + b2_ref[...])
    a = jnp.tanh(
        jnp.dot(a, w3_ref[...], preferred_element_type=jnp.float32)
        + b3_ref[...])
    # Final Linear (no activation). Output feature dim is pre-padded to 128 lanes
    # so this store is unmasked and lane-dense.
    o_ref[...] = (
        jnp.dot(a, w4_ref[...], preferred_element_type=jnp.float32)
        + b4_ref[...])


@functools.partial(jax.jit, static_argnames=("tm",))
def p_forward(x, w1, b1, w2, b2, w3, b3, w4, b4, *, tm=512):
    """Pallas forward pass of module P.

    x:  (N, d0)           float32
    wi: (d_in_i, d_out_i) float32   (already transposed from torch (out,in) layout)
    bi: (1, d_out_i)      float32
    returns (N, d_out) float32
    """
    N, d0 = x.shape
    h1, h2, h3 = w1.shape[1], w2.shape[1], w3.shape[1]
    d_out = w4.shape[1]

    # --- Lane-dense output: pad the output feature dim to a full 128-lane width.
    d_out_p = max(_round_up(d_out, 128), 128)
    w4p = jnp.zeros((h3, d_out_p), w4.dtype).at[:, :d_out].set(w4)
    b4p = jnp.zeros((1, d_out_p), b4.dtype).at[:, :d_out].set(b4)

    # --- Row tile: large to amortize per-grid-step overhead, clamped for small N.
    tm_eff = min(tm, _round_up(N, 8))
    tm_eff = _round_up(tm_eff, 8)
    Np = _round_up(N, tm_eff)
    if Np != N:
        x = jnp.zeros((Np, d0), x.dtype).at[:N].set(x)

    grid = (Np // tm_eff,)

    def row_map(i):
        return (i, 0)

    def full_map(i):
        return (0, 0)

    out_p = pl.pallas_call(
        _mlp_kernel,
        out_shape=jax.ShapeDtypeStruct((Np, d_out_p), jnp.float32),
        grid_spec=pltpu.PrefetchScalarGridSpec(
            num_scalar_prefetch=0,
            grid=grid,
            in_specs=[
                pl.BlockSpec((tm_eff, d0), row_map),   # x tile
                pl.BlockSpec((d0, h1), full_map),      # W1
                pl.BlockSpec((1, h1), full_map),       # b1
                pl.BlockSpec((h1, h2), full_map),      # W2
                pl.BlockSpec((1, h2), full_map),       # b2
                pl.BlockSpec((h2, h3), full_map),      # W3
                pl.BlockSpec((1, h3), full_map),       # b3
                pl.BlockSpec((h3, d_out_p), full_map),  # W4 (padded)
                pl.BlockSpec((1, d_out_p), full_map),   # b4 (padded)
            ],
            out_specs=pl.BlockSpec((tm_eff, d_out_p), row_map),
        ),
        compiler_params=pltpu.CompilerParams(
            dimension_semantics=("parallel",)),
    )(x, w1, b1, w2, b2, w3, b3, w4p, b4p)

    # Drop the batch padding and the lane padding of the output feature dim.
    return out_p[:N, :d_out]


def _reference_forward(x, params):
    """Pure-JAX reference mirroring the PyTorch forward."""
    a = x
    for i, (w, b) in enumerate(params):
        z = a @ w + b
        a = jnp.tanh(z) if i < len(params) - 1 else z
    return a


if __name__ == "__main__":
    # Synthetic TGPT-PINN-style configuration: layers = [2, 32, 32, 32, 1].
    layers = [2, 32, 32, 32, 1]
    N = 200  # not a multiple of the tile -> exercises the padding path

    key = jax.random.PRNGKey(0)
    keys = jax.random.split(key, 9)

    # Torch Linear stores weight as (out, in); generate in that convention then
    # transpose to (in, out) for the kernel.
    w1_t = jax.random.normal(keys[0], (layers[1], layers[0]), jnp.float32) * 0.5
    w2_t = jax.random.normal(keys[1], (layers[2], layers[1]), jnp.float32) * 0.3
    w3_t = jax.random.normal(keys[2], (layers[3], layers[2]), jnp.float32) * 0.3
    w4_t = jax.random.normal(keys[3], (layers[4], layers[3]), jnp.float32) * 0.3
    b1 = jax.random.normal(keys[4], (layers[1],), jnp.float32) * 0.1
    b2 = jax.random.normal(keys[5], (layers[2],), jnp.float32) * 0.1
    b3 = jax.random.normal(keys[6], (layers[3],), jnp.float32) * 0.1
    b4 = jax.random.normal(keys[7], (layers[4],), jnp.float32) * 0.1

    x = jax.random.normal(keys[8], (N, layers[0]), jnp.float32)

    w1, w2, w3, w4 = w1_t.T, w2_t.T, w3_t.T, w4_t.T
    b1r, b2r, b3r, b4r = (b1[None, :], b2[None, :], b3[None, :], b4[None, :])

    ref = _reference_forward(x, [(w1, b1), (w2, b2), (w3, b3), (w4, b4)])

    # Multi-step grid (tm=64 -> 4 grid steps after padding to 256 rows).
    out_small_tile = p_forward(x, w1, b1r, w2, b2r, w3, b3r, w4, b4r, tm=64)
    out_small_tile = jax.block_until_ready(out_small_tile)
    assert out_small_tile.shape == (N, 1)
    assert jnp.allclose(out_small_tile, ref, atol=1e-5, rtol=1e-5)

    # Default production tile (clamped to the small batch here).
    out_default = p_forward(x, w1, b1r, w2, b2r, w3, b3r, w4, b4r)
    out_default = jax.block_until_ready(out_default)
    assert out_default.shape == (N, 1)
    assert jnp.allclose(out_default, ref, atol=1e-5, rtol=1e-5)

    print("KERNEL_OK")
</pallas_src>

<mosaic_0001>
module attributes {stable_mosaic.version = 11 : i64} {
  func.func @_mlp_kernel(%arg0: i32, %arg1: memref<64x2xf32, #tpu.memory_space<vmem>>, %arg2: memref<2x32xf32, #tpu.memory_space<vmem>>, %arg3: memref<1x32xf32, #tpu.memory_space<vmem>>, %arg4: memref<32x32xf32, #tpu.memory_space<vmem>>, %arg5: memref<1x32xf32, #tpu.memory_space<vmem>>, %arg6: memref<32x32xf32, #tpu.memory_space<vmem>>, %arg7: memref<1x32xf32, #tpu.memory_space<vmem>>, %arg8: memref<32x128xf32, #tpu.memory_space<vmem>>, %arg9: memref<1x128xf32, #tpu.memory_space<vmem>>, %arg10: memref<64x128xf32, #tpu.memory_space<vmem>>) attributes {dimension_semantics = [#tpu.dimension_semantics<parallel>], iteration_bounds = array<i64: 4>, scalar_prefetch = 0 : i64, scratch_operands = 0 : i64, tpu.core_type = #tpu.core_type<tc>, window_params = [{transform_indices = @transform_0, window_bounds = array<i64: 64, 2>}, {pipeline_mode = #tpu.pipeline_mode<synchronous>, transform_indices = @transform_1, window_bounds = array<i64: 2, 32>}, {pipeline_mode = #tpu.pipeline_mode<synchronous>, transform_indices = @transform_2, window_bounds = array<i64: 1, 32>}, {pipeline_mode = #tpu.pipeline_mode<synchronous>, transform_indices = @transform_3, window_bounds = array<i64: 32, 32>}, {pipeline_mode = #tpu.pipeline_mode<synchronous>, transform_indices = @transform_4, window_bounds = array<i64: 1, 32>}, {pipeline_mode = #tpu.pipeline_mode<synchronous>, transform_indices = @transform_5, window_bounds = array<i64: 32, 32>}, {pipeline_mode = #tpu.pipeline_mode<synchronous>, transform_indices = @transform_6, window_bounds = array<i64: 1, 32>}, {pipeline_mode = #tpu.pipeline_mode<synchronous>, transform_indices = @transform_7, window_bounds = array<i64: 32, 128>}, {pipeline_mode = #tpu.pipeline_mode<synchronous>, transform_indices = @transform_8, window_bounds = array<i64: 1, 128>}, {transform_indices = @transform_9, window_bounds = array<i64: 64, 128>}]} {
    %c0 = arith.constant 0 : index
    %c0_0 = arith.constant 0 : index
    %0 = vector.load %arg1[%c0, %c0_0] : memref<64x2xf32, #tpu.memory_space<vmem>>, vector<64x2xf32>
    %c0_1 = arith.constant 0 : index
    %c0_2 = arith.constant 0 : index
    %1 = vector.load %arg2[%c0_1, %c0_2] : memref<2x32xf32, #tpu.memory_space<vmem>>, vector<2x32xf32>
    %c0_3 = arith.constant 0 : index
    %c0_4 = arith.constant 0 : index
    %2 = vector.load %arg3[%c0_3, %c0_4] : memref<1x32xf32, #tpu.memory_space<vmem>>, vector<1x32xf32>
    %3 = vector.extract_strided_slice %0 {offsets = [0, 0], sizes = [64, 1], strides = [1, 1]} : vector<64x2xf32> to vector<64x1xf32>
    %4 = vector.extract_strided_slice %1 {offsets = [0, 0], sizes = [1, 32], strides = [1, 1]} : vector<2x32xf32> to vector<1x32xf32>
    %5 = vector.broadcast %3 : vector<64x1xf32> to vector<64x32xf32>
    %6 = vector.broadcast %4 : vector<1x32xf32> to vector<64x32xf32>
    %7 = arith.mulf %5, %6 : vector<64x32xf32>
    %8 = vector.broadcast %2 : vector<1x32xf32> to vector<64x32xf32>
    %9 = arith.addf %7, %8 : vector<64x32xf32>
    %10 = vector.extract_strided_slice %0 {offsets = [0, 1], sizes = [64, 1], strides = [1, 1]} : vector<64x2xf32> to vector<64x1xf32>
    %11 = vector.extract_strided_slice %1 {offsets = [1, 0], sizes = [1, 32], strides = [1, 1]} : vector<2x32xf32> to vector<1x32xf32>
    %12 = vector.broadcast %10 : vector<64x1xf32> to vector<64x32xf32>
    %13 = vector.broadcast %11 : vector<1x32xf32> to vector<64x32xf32>
    %14 = arith.mulf %12, %13 : vector<64x32xf32>
    %15 = arith.addf %9, %14 : vector<64x32xf32>
    %16 = math.tanh %15 : vector<64x32xf32>
    %c0_5 = arith.constant 0 : index
    %c0_6 = arith.constant 0 : index
    %17 = vector.load %arg4[%c0_5, %c0_6] : memref<32x32xf32, #tpu.memory_space<vmem>>, vector<32x32xf32>
    %cst = arith.constant dense<0.000000e+00> : vector<64x32xf32>
    %18 = tpu.matmul %16, %17, %cst {dimension_numbers = #tpu.dot_dimension_numbers<[1], [0], [0], [1], [0, 0, 1, 1], [], []>} : vector<64x32xf32>, vector<32x32xf32>, vector<64x32xf32> -> vector<64x32xf32>
    %c0_7 = arith.constant 0 : index
    %c0_8 = arith.constant 0 : index
    %19 = vector.load %arg5[%c0_7, %c0_8] : memref<1x32xf32, #tpu.memory_space<vmem>>, vector<1x32xf32>
    %20 = vector.broadcast %19 : vector<1x32xf32> to vector<64x32xf32>
    %21 = arith.addf %18, %20 : vector<64x32xf32>
    %22 = math.tanh %21 : vector<64x32xf32>
    %c0_9 = arith.constant 0 : index
    %c0_10 = arith.constant 0 : index
    %23 = vector.load %arg6[%c0_9, %c0_10] : memref<32x32xf32, #tpu.memory_space<vmem>>, vector<32x32xf32>
    %cst_11 = arith.constant dense<0.000000e+00> : vector<64x32xf32>
    %24 = tpu.matmul %22, %23, %cst_11 {dimension_numbers = #tpu.dot_dimension_numbers<[1], [0], [0], [1], [0, 0, 1, 1], [], []>} : vector<64x32xf32>, vector<32x32xf32>, vector<64x32xf32> -> vector<64x32xf32>
    %c0_12 = arith.constant 0 : index
    %c0_13 = arith.constant 0 : index
    %25 = vector.load %arg7[%c0_12, %c0_13] : memref<1x32xf32, #tpu.memory_space<vmem>>, vector<1x32xf32>
    %26 = vector.broadcast %25 : vector<1x32xf32> to vector<64x32xf32>
    %27 = arith.addf %24, %26 : vector<64x32xf32>
    %28 = math.tanh %27 : vector<64x32xf32>
    %c0_14 = arith.constant 0 : index
    %c0_15 = arith.constant 0 : index
    %29 = vector.load %arg8[%c0_14, %c0_15] : memref<32x128xf32, #tpu.memory_space<vmem>>, vector<32x128xf32>
    %cst_16 = arith.constant dense<0.000000e+00> : vector<64x128xf32>
    %30 = tpu.matmul %28, %29, %cst_16 {dimension_numbers = #tpu.dot_dimension_numbers<[1], [0], [0], [1], [0, 0, 1, 1], [], []>} : vector<64x32xf32>, vector<32x128xf32>, vector<64x128xf32> -> vector<64x128xf32>
    %c0_17 = arith.constant 0 : index
    %c0_18 = arith.constant 0 : index
    %31 = vector.load %arg9[%c0_17, %c0_18] : memref<1x128xf32, #tpu.memory_space<vmem>>, vector<1x128xf32>
    %32 = vector.broadcast %31 : vector<1x128xf32> to vector<64x128xf32>
    %33 = arith.addf %30, %32 : vector<64x128xf32>
    %c0_19 = arith.constant 0 : index
    %c0_20 = arith.constant 0 : index
    %34 = vector.load %arg10[%c0_19, %c0_20] : memref<64x128xf32, #tpu.memory_space<vmem>>, vector<64x128xf32>
    tpu.vector_store %arg10[%c0_19, %c0_20], %33 {strides = array<i32>} : memref<64x128xf32, #tpu.memory_space<vmem>>, vector<64x128xf32>,
    return
  }
  func.func @transform_0(%arg0: i32) -> (i32, i32) {
    %c0_i32 = arith.constant 0 : i32
    %c0_i32_0 = arith.constant 0 : i32
    return %arg0, %c0_i32 : i32, i32
  }
  func.func @transform_1(%arg0: i32) -> (i32, i32) {
    %c0_i32 = arith.constant 0 : i32
    %c0_i32_0 = arith.constant 0 : i32
    %c0_i32_1 = arith.constant 0 : i32
    return %c0_i32, %c0_i32_0 : i32, i32
  }
  func.func @transform_2(%arg0: i32) -> (i32, i32) {
    %c0_i32 = arith.constant 0 : i32
    %c0_i32_0 = arith.constant 0 : i32
    %c0_i32_1 = arith.constant 0 : i32
    return %c0_i32, %c0_i32_0 : i32, i32
  }
  func.func @transform_3(%arg0: i32) -> (i32, i32) {
    %c0_i32 = arith.constant 0 : i32
    %c0_i32_0 = arith.constant 0 : i32
    %c0_i32_1 = arith.constant 0 : i32
    return %c0_i32, %c0_i32_0 : i32, i32
  }
  func.func @transform_4(%arg0: i32) -> (i32, i32) {
    %c0_i32 = arith.constant 0 : i32
    %c0_i32_0 = arith.constant 0 : i32
    %c0_i32_1 = arith.constant 0 : i32
    return %c0_i32, %c0_i32_0 : i32, i32
  }
  func.func @transform_5(%arg0: i32) -> (i32, i32) {
    %c0_i32 = arith.constant 0 : i32
    %c0_i32_0 = arith.constant 0 : i32
    %c0_i32_1 = arith.constant 0 : i32
    return %c0_i32, %c0_i32_0 : i32, i32
  }
  func.func @transform_6(%arg0: i32) -> (i32, i32) {
    %c0_i32 = arith.constant 0 : i32
    %c0_i32_0 = arith.constant 0 : i32
    %c0_i32_1 = arith.constant 0 : i32
    return %c0_i32, %c0_i32_0 : i32, i32
  }
  func.func @transform_7(%arg0: i32) -> (i32, i32) {
    %c0_i32 = arith.constant 0 : i32
    %c0_i32_0 = arith.constant 0 : i32
    %c0_i32_1 = arith.constant 0 : i32
    return %c0_i32, %c0_i32_0 : i32, i32
  }
  func.func @transform_8(%arg0: i32) -> (i32, i32) {
    %c0_i32 = arith.constant 0 : i32
    %c0_i32_0 = arith.constant 0 : i32
    %c0_i32_1 = arith.constant 0 : i32
    return %c0_i32, %c0_i32_0 : i32, i32
  }
  func.func @transform_9(%arg0: i32) -> (i32, i32) {
    %c0_i32 = arith.constant 0 : i32
    %c0_i32_0 = arith.constant 0 : i32
    return %arg0, %c0_i32 : i32, i32
  }
}

</mosaic_0001>

<bundles_post_ra>
// kernel: p_forward.1
= control target key start
LH: loop header
LB: loop body
LE: loop exit
PB: predicated region body
PF: predicated region fallthrough
CT: control target
= control target key end

     0   :  { %s945_s30 = smov 0   ;;  %s1064_s0 = inlined_call_operand.vmem [shape: f32[256,2], index: 0, kind: input, shape index: {}]   ;;  %s1065_s1 = inlined_call_operand.vmem [shape: f32[2,32], index: 1, kind: input, shape index: {}]   ;;  %s1066_s2 = inlined_call_operand.vmem [shape: f32[1,32], index: 2, kind: input, shape index: {}]   ;;  %s1067_s3 = inlined_call_operand.vmem [shape: f32[32,32], index: 3, kind: input, shape index: {}]   ;;  %s1068_s4 = inlined_call_operand.vmem [shape: f32[1,32], index: 4, kind: input, shape index: {}]   ;;  %s1069_s5 = inlined_call_operand.vmem [shape: f32[32,32], index: 5, kind: input, shape index: {}]   ;;  %s1070_s6 = inlined_call_operand.vmem [shape: f32[1,32], index: 6, kind: input, shape index: {}]   ;;  %s1071_s7 = inlined_call_operand.vmem [shape: f32[32,128], index: 7, kind: input, shape index: {}]   ;;  %s1072_s8 = inlined_call_operand.vmem [shape: f32[1,128], index: 8, kind: input, shape index: {}]   ;;  %s1073_s9 = inlined_call_operand.vmem [shape: f32[256,128], index: 9, kind: output, shape index: {}]  }
   0x1 LB: > { %s763_s10 = sadd.s32 4294967295, %s891_s30   ;;  %p767_p0 = scmp.ge.s32.totalorder %s891_s30, 1  ;;  %s891_s30 = sphi %s945_s30, %s19_s30  }
   0x2   : > { %p288_p1 = scmp.lt.s32.totalorder %s891_s30, 5 }
   0x4   : > { %p289_p2 = pnand %p767_p0, %p288_p1 }
   0x5   : > { %s768_s11 = sshll.u32 (!%p289_p2), %s763_s10, 3 }
   0x6   : > { %292 = sbr.rel (%p289_p2) target bundleno = 596 (0x254), region = 56  ;;  %p325_p3 = scmp.lt.s32.totalorder (!%p289_p2), %s768_s11, 31 }
   0xb   : > { %v893_v0 = vmov 0   ;;  %s1075_s11 = smov (!%p325_p3, %s768_s11), 31  ;;  %v894_v4 = vmov 1   ;;  %v466_v10 = vld [vmem:[%s1067_s3 + $0x18] sm:$0xff]  ;;  %v465_v11 = vld [vmem:[%s1067_s3 + $0x10] sm:$0xff]  ;;  %v464_v12 = vld [vmem:[%s1067_s3 + $0x8] sm:$0xff] }
   0xc   : > { %822 = vset.pattern.permute.xlu1 %v893_v0  ;;  %820 = vset.pattern.permute.xlu0 %v893_v0  ;;  %s769_s12 = sshll.u32 %s1075_s11, 3  ;;  %v463_v13 = vld [vmem:[%s1067_s3] sm:$0xff]  ;;  %vm471_vm0 = vcmask 261120  }
   0xd   : > { %824 = vset.pattern.permute.xlu2 %v893_v0  ;;  %s961_s15 = scalar_lea.vmem %s1064_s0, %s769_s12  ;;  %508 = vmatpush.msra.mxu0 %v466_v10  ;;  %v344_v15 = vld [vmem:[%s1065_s1] sm:$0x3]  ;;  %s334_s16 = scalar_lea.vmem %s1073_s9, %s769_s12 }
   0xe   : > { %v337_v1 = vld [vmem:[%s961_s15 + $0x8] sm:$0xff]  ;;  %v336_v2 = vld [vmem:[%s961_s15] sm:$0xff]  ;;  %v338_v3 = vld [vmem:[%s961_s15 + $0x10] sm:$0xff]  ;;  %798 = vmatpush.msra.mxu3 %v466_v10  ;;  %v386_v18 = vperm.slane %v344_v15, 0  ;;  %v438_v22 = vperm.slane %v344_v15, 1 }
   0xf   : > { %353 = vperm.xlu1 %822, %v337_v1   ;;  %348 = vperm.xlu0 %820, %v336_v2   ;;  %v342_v5 = vld [vmem:[%s961_s15 + $0x30] sm:$0xff]  ;;  %v339_v6 = vld [vmem:[%s961_s15 + $0x18] sm:$0xff]  ;;  %v340_v7 = vld [vmem:[%s961_s15 + $0x20] sm:$0xff] }
  0x10   : > { %358 = vperm.xlu2 %824, %v338_v3   ;;  %v343_v8 = vld [vmem:[%s961_s15 + $0x38] sm:$0xff]  ;;  %v341_v9 = vld [vmem:[%s961_s15 + $0x28] sm:$0xff]  ;;  %509 = vmatpush.msra.mxu0 %v465_v11  ;;  %v989_v20 = vld [vmem:[%s1066_s2] ss:$0 sm:$0xff] }
  0x11   : > { %799 = vmatpush.msra.mxu3 %v465_v11  ;;  %v548_v10 = vld [vmem:[%s1069_s5 + $0x18] sm:$0xff]  ;;  %v547_v11 = vld [vmem:[%s1069_s5 + $0x10] sm:$0xff] }
  0x12   : > { %510 = vmatpush.msra.mxu0 %v464_v12  ;;  %589 = vmatpush.msra.mxu1 %v548_v10 }
  0x13   : > { %800 = vmatpush.msra.mxu3 %v464_v12  ;;  %v546_v12 = vld [vmem:[%s1069_s5 + $0x8] sm:$0xff] }
  0x14   : > { %511 = vmatpush.msra.mxu0 %v463_v13  ;;  %590 = vmatpush.msra.mxu1 %v547_v11 }
  0x15   : > { %801 = vmatpush.msra.mxu3 %v463_v13  ;;  %v545_v13 = vld [vmem:[%s1069_s5] sm:$0xff] }
  0x16   : > { %591 = vmatpush.msra.mxu1 %v546_v12 }
  0x17   : > { %823 = vset.pattern.permute.xlu1 %v894_v4  ;;  %821 = vset.pattern.permute.xlu0 %v894_v4 }
  0x18   : > { %411 = vperm.xlu1 %823, %v337_v1   ;;  %407 = vperm.xlu0 %821, %v336_v2  }
  0x19   : > { %825 = vset.pattern.permute.xlu2 %v894_v4  ;;  %802 = vmatpush.msrb.mxu3 %v548_v10 }
  0x1a   : > { %415 = vperm.xlu2 %825, %v338_v3   ;;  %592 = vmatpush.msra.mxu1 %v545_v13 }
  0x1b   : > { %803 = vmatpush.msrb.mxu3 %v547_v11 }
  0x1d   : > { %804 = vmatpush.msrb.mxu3 %v546_v12 }
  0x1f   : > { %805 = vmatpush.msrb.mxu3 %v545_v13 }
  0x20   : > { %826 = vset.pattern.permute.xlu1 %v893_v0  ;;  %827 = vset.pattern.permute.xlu0 %v893_v0 }
  0x21   : > { %378 = vperm.xlu1 %826, %v342_v5   ;;  %363 = vperm.xlu0 %827, %v339_v6  }
  0x22   : > { %431 = vperm.xlu2 %825, %v342_v5  }
  0x29   : > { %828 = vset.pattern.permute.xlu1 %v894_v4  ;;  %830 = vset.pattern.permute.xlu0 %v894_v4 }
  0x2a   : > { %419 = vperm.xlu1 %828, %v339_v6   ;;  %423 = vperm.xlu0 %830, %v340_v7  }
  0x2b   : > { %829 = vset.pattern.permute.xlu2 %v893_v0 }
  0x2c   : > { %383 = vperm.xlu2 %829, %v343_v8  }
  0x32   : > { %435 = vperm.xlu1 %828, %v343_v8  }
  0x34   : > { %368 = vperm.xlu2 %829, %v340_v7  }
  0x3a   : > { %831 = vset.pattern.permute.xlu1 %v893_v0 }
  0x3b   : > { %373 = vperm.xlu1 %831, %v341_v9  }
  0x3c   : > { %832 = vset.pattern.permute.xlu2 %v894_v4 }
  0x3d   : > { %427 = vperm.xlu2 %832, %v341_v9  }
  0x6a   : > { %v359_v14 = vpop.permute.xlu2 %358 }
  0x6b   : > { %v389_v33 = vmul.f32 %v386_v18, %v359_v14  ;;  %v834_v14 = vld [vmem:[%s1068_s4] ss:$0 sm:$0xff] }
  0x6d   : > { %v400_v40 = vadd.f32 %v989_v20, %v389_v33 }
  0x74   : > { %v416_v19 = vpop.permute.xlu2 %415 }
  0x75   : > { %v441_v41 = vmul.f32 %v438_v22, %v416_v19 }
  0x77   : > { %v449_v44 = vadd.f32 %v441_v41, %v400_v40  ;;  %v628_v40 = vld [vmem:[%s1071_s7 + $0x10] sm:$0xff]  ;;  %v627_v41 = vld [vmem:[%s1071_s7 + $0x8] sm:$0xff] }
  0x7c   : > { %v432_v28 = vpop.permute.xlu2 %431 }
  0x7d   : > { %v445_v37 = vmul.f32 %v438_v22, %v432_v28 }
  0x81   : > { %v349_v16 = vpop.permute.xlu0 %348  ;;  %v354_v17 = vpop.permute.xlu1 %353 }
  0x82   : > { %v387_v21 = vmul.f32 %v386_v18, %v349_v16  ;;  %v388_v29 = vmul.f32 %v386_v18, %v354_v17 }
  0x84   : > { %v398_v25 = vadd.f32 %v989_v20, %v387_v21  ;;  %v399_v31 = vadd.f32 %v989_v20, %v388_v29 }
  0x86   : > { %v384_v39 = vpop.permute.xlu2 %383 }
  0x87   : > { %v394_v51 = vmul.f32 %v386_v18, %v384_v39  ;;  %v629_v39 = vld [vmem:[%s1071_s7 + $0x18] sm:$0xff] }
  0x88   : > { %670 = vmatpush.msra.mxu2 %v629_v39 }
  0x89   : > { %v405_v56 = vadd.f32 %v989_v20, %v394_v51 }
  0x8a   : > { %v412_v23 = vpop.permute.xlu1 %411  ;;  %v408_v24 = vpop.permute.xlu0 %407  ;;  %671 = vmatpush.msra.mxu2 %v628_v40 }
  0x8b   : > { %v439_v26 = vmul.f32 %v438_v22, %v408_v24  ;;  %v440_v30 = vmul.f32 %v438_v22, %v412_v23 }
  0x8c   : > { %672 = vmatpush.msra.mxu2 %v627_v41 }
  0x8d   : > { %v447_v27 = vadd.f32 %v439_v26, %v398_v25  ;;  %v448_v34 = vadd.f32 %v440_v30, %v399_v31 }
  0x8e   : > { %v369_v52 = vpop.permute.xlu2 %368 }
  0x8f   : > { %837 = vtanh.f32 %v447_v27  ;;  %v391_v54 = vmul.f32 %v386_v18, %v369_v52 }
  0x90   : > { %839 = vtanh.f32 %v448_v34 }
  0x91   : > { %v402_v61 = vadd.f32 %v989_v20, %v391_v54 }
  0x93   : > { %v379_v32 = vpop.permute.xlu1 %378  ;;  %v364_v43 = vpop.permute.xlu0 %363 }
  0x94   : > { %v393_v35 = vmul.f32 %v386_v18, %v379_v32  ;;  %v390_v45 = vmul.f32 %v386_v18, %v364_v43  ;;  %v835_v43 = vld [vmem:[%s1070_s6] ss:$0 sm:$0xff] }
  0x95   : > { %v838_v36 = vpop.eup %837 }
  0x96   : > { %v404_v38 = vadd.f32 %v989_v20, %v393_v35  ;;  %772 = vmatmul.msk.f32.vlgmr.msra.gmra.mxu0 %vm471_vm0, %v838_v36  ;;  %v840_v47 = vpop.eup %839  ;;  %v401_v49 = vadd.f32 %v989_v20, %v390_v45 }
  0x97   : > { %v428_v63 = vpop.permute.xlu2 %427 }
  0x98   : > { %v453_v42 = vadd.f32 %v445_v37, %v404_v38  ;;  %v444_v4 = vmul.f32 %v438_v22, %v428_v63 }
  0x9a   : > { %841 = vtanh.f32 %v453_v42  ;;  %v626_v42 = vld [vmem:[%s1071_s7] sm:$0xff] }
  0x9b   : > { %843 = vtanh.f32 %v449_v44  ;;  %673 = vmatpush.msra.mxu2 %v626_v42 }
  0x9c   : > { %v420_v46 = vpop.permute.xlu1 %419  ;;  %v424_v57 = vpop.permute.xlu0 %423 }
  0x9d   : > { %v442_v50 = vmul.f32 %v438_v22, %v420_v46  ;;  %v443_v62 = vmul.f32 %v438_v22, %v424_v57 }
  0x9e   : > { %773 = vmatmul.msk.f32.gmra.mxu0 %vm471_vm0, %v840_v47 }
  0x9f   : > { %v450_v53 = vadd.f32 %v442_v50, %v401_v49  ;;  %v451_v0 = vadd.f32 %v443_v62, %v402_v61 }
  0xa0   : > { %v842_v48 = vpop.eup %841 }
  0xa1   : > { %778 = vmatmul.msk.f32.vlgmr.msra.gmra.mxu3 %vm471_vm0, %v842_v48  ;;  %v844_v59 = vpop.eup %843  ;;  %845 = vtanh.f32 %v450_v53 }
  0xa2   : > { %806 = vmatpush.msra.mxu3 %v629_v39 }
  0xa4   : > { %v436_v55 = vpop.permute.xlu1 %435  ;;  %807 = vmatpush.msra.mxu3 %v628_v40 }
  0xa5   : > { %v446_v58 = vmul.f32 %v438_v22, %v436_v55 }
  0xa6   : > { %774 = vmatmul.msk.f32.gmra.mxu0 %vm471_vm0, %v844_v59  ;;  %808 = vmatpush.msra.mxu3 %v627_v41 }
  0xa7   : > { %v454_v60 = vadd.f32 %v446_v58, %v405_v56  ;;  %v846_v2 = vpop.eup %845 }
  0xa8   : > { %809 = vmatpush.msra.mxu3 %v626_v42 }
  0xa9   : > { %847 = vtanh.f32 %v454_v60 }
  0xaa   : > { %849 = vtanh.f32 %v451_v0 }
  0xad   : > { %v374_v1 = vpop.permute.xlu1 %373 }
  0xae   : > { %v392_v3 = vmul.f32 %v386_v18, %v374_v1  ;;  %775 = vmatmul.msk.f32.gmra.mxu0 %vm471_vm0, %v846_v2 }
  0xaf   : > { %v848_v5 = vpop.eup %847 }
  0xb0   : > { %779 = vmatmul.msk.f32.gmra.mxu3 %vm471_vm0, %v848_v5  ;;  %v403_v6 = vadd.f32 %v989_v20, %v392_v3  ;;  %v850_v8 = vpop.eup %849 }
  0xb2   : > { %v452_v7 = vadd.f32 %v444_v4, %v403_v6  ;;  %v836_v4 = vld [vmem:[%s1072_s8] ss:$0 sm:$0xff] }
  0xb4   : > { %851 = vtanh.f32 %v452_v7 }
  0xb6   : > { %776 = vmatmul.msk.f32.gmra.mxu0 %vm471_vm0, %v850_v8 }
  0xba   : > { %v852_v9 = vpop.eup %851 }
  0xbe   : > { %777 = vmatmul.msk.f32.gmra.mxu0 %vm471_vm0, %v852_v9 }
 0x113   : > { %v513_v15 = vpop.f32.mrf.mxu0 }
 0x114   : > { %v514_v16 = vadd.f32 %v834_v14, %v513_v15 }
 0x116   : > { %853 = vtanh.f32 %v514_v16 }
 0x11b   : > { %v516_v17 = vpop.f32.mrf.mxu0 }
 0x11c   : > { %v854_v18 = vpop.eup %853  ;;  %v517_v19 = vadd.f32 %v834_v14, %v516_v17 }
 0x11d   : > { %780 = vmatmul.msk.f32.vlgmr.msra.gmra.mxu1 %vm471_vm0, %v854_v18 }
 0x11e   : > { %855 = vtanh.f32 %v517_v19 }
 0x123   : > { %v519_v20 = vpop.f32.mrf.mxu0 }
 0x124   : > { %v531_v21 = vpop.f32.mrf.mxu3  ;;  %v856_v22 = vpop.eup %855  ;;  %v520_v23 = vadd.f32 %v834_v14, %v519_v20 }
 0x125   : > { %v532_v24 = vadd.f32 %v834_v14, %v531_v21  ;;  %781 = vmatmul.msk.f32.gmra.mxu1 %vm471_vm0, %v856_v22 }
 0x126   : > { %857 = vtanh.f32 %v520_v23 }
 0x127   : > { %859 = vtanh.f32 %v532_v24 }
 0x12b   : > { %v522_v25 = vpop.f32.mrf.mxu0 }
 0x12c   : > { %v858_v26 = vpop.eup %857  ;;  %v523_v27 = vadd.f32 %v834_v14, %v522_v25 }
 0x12d   : > { %v860_v28 = vpop.eup %859  ;;  %782 = vmatmul.msk.f32.gmra.mxu1 %vm471_vm0, %v858_v26 }
 0x12e   : > { %861 = vtanh.f32 %v523_v27  ;;  %786 = vmatmul.msk.f32.vlgmr.msrb.gmra.mxu3 %vm471_vm0, %v860_v28 }
 0x133   : > { %v534_v29 = vpop.f32.mrf.mxu3  ;;  %v525_v30 = vpop.f32.mrf.mxu0 }
 0x134   : > { %v535_v31 = vadd.f32 %v834_v14, %v534_v29  ;;  %v862_v32 = vpop.eup %861  ;;  %v526_v33 = vadd.f32 %v834_v14, %v525_v30 }
 0x135   : > { %783 = vmatmul.msk.f32.gmra.mxu1 %vm471_vm0, %v862_v32 }
 0x136   : > { %863 = vtanh.f32 %v535_v31 }
 0x137   : > { %865 = vtanh.f32 %v526_v33 }
 0x13b   : > { %v528_v35 = vpop.f32.mrf.mxu0 }
 0x13c   : > { %v864_v34 = vpop.eup %863  ;;  %v529_v37 = vadd.f32 %v834_v14, %v528_v35 }
 0x13d   : > { %v866_v36 = vpop.eup %865  ;;  %787 = vmatmul.msk.f32.gmra.mxu3 %vm471_vm0, %v864_v34 }
 0x13e   : > { %784 = vmatmul.msk.f32.gmra.mxu1 %vm471_vm0, %v866_v36  ;;  %867 = vtanh.f32 %v529_v37 }
 0x144   : > { %v868_v38 = vpop.eup %867 }
 0x146   : > { %785 = vmatmul.msk.f32.gmra.mxu1 %vm471_vm0, %v868_v38 }
 0x19a   : > { %v594_v44 = vpop.f32.mrf.mxu1 }
 0x19b   : > { %v595_v45 = vadd.f32 %v835_v43, %v594_v44 }
 0x19d   : > { %869 = vtanh.f32 %v595_v45 }
 0x1a2   : > { %v597_v46 = vpop.f32.mrf.mxu1 }
 0x1a3   : > { %v870_v47 = vpop.eup %869  ;;  %v598_v48 = vadd.f32 %v835_v43, %v597_v46 }
 0x1a4   : > { %788 = vmatmul.msk.f32.vlgmr.msra.gmra.mxu2 %vm471_vm0, %v870_v47 }
 0x1a5   : > { %871 = vtanh.f32 %v598_v48 }
 0x1aa   : > { %v600_v49 = vpop.f32.mrf.mxu1 }
 0x1ab   : > { %v872_v50 = vpop.eup %871  ;;  %v601_v51 = vadd.f32 %v835_v43, %v600_v49 }
 0x1ac   : > { %789 = vmatmul.msk.f32.gmra.mxu2 %vm471_vm0, %v872_v50 }
 0x1ad   : > { %873 = vtanh.f32 %v601_v51 }
 0x1b1   : > { %v612_v52 = vpop.f32.mrf.mxu3 }
 0x1b2   : > { %v613_v53 = vadd.f32 %v835_v43, %v612_v52  ;;  %v603_v54 = vpop.f32.mrf.mxu1 }
 0x1b3   : > { %v874_v55 = vpop.eup %873  ;;  %v604_v56 = vadd.f32 %v835_v43, %v603_v54 }
 0x1b4   : > { %875 = vtanh.f32 %v613_v53  ;;  %790 = vmatmul.msk.f32.gmra.mxu2 %vm471_vm0, %v874_v55 }
 0x1b5   : > { %877 = vtanh.f32 %v604_v56 }
 0x1ba   : > { %v876_v57 = vpop.eup %875 }
 0x1bb   : > { %v606_v58 = vpop.f32.mrf.mxu1  ;;  %v878_v59 = vpop.eup %877  ;;  %794 = vmatmul.msk.f32.vlgmr.msra.gmra.mxu3 %vm471_vm0, %v876_v57 }
 0x1bc   : > { %v607_v60 = vadd.f32 %v835_v43, %v606_v58  ;;  %791 = vmatmul.msk.f32.gmra.mxu2 %vm471_vm0, %v878_v59 }
 0x1be   : > { %879 = vtanh.f32 %v607_v60 }
 0x1c0   : > { %v615_v61 = vpop.f32.mrf.mxu3 }
 0x1c1   : > { %v616_v62 = vadd.f32 %v835_v43, %v615_v61 }
 0x1c3   : > { %881 = vtanh.f32 %v616_v62  ;;  %v609_v63 = vpop.f32.mrf.mxu1 }
 0x1c4   : > { %v880_v0 = vpop.eup %879  ;;  %v610_v1 = vadd.f32 %v835_v43, %v609_v63 }
 0x1c5   : > { %792 = vmatmul.msk.f32.gmra.mxu2 %vm471_vm0, %v880_v0 }
 0x1c6   : > { %883 = vtanh.f32 %v610_v1 }
 0x1c9   : > { %v882_v2 = vpop.eup %881 }
 0x1ca   : > { %795 = vmatmul.msk.f32.gmra.mxu3 %vm471_vm0, %v882_v2 }
 0x1cc   : > { %v884_v3 = vpop.eup %883 }
 0x1cd   : > { %793 = vmatmul.msk.f32.gmra.mxu2 %vm471_vm0, %v884_v3 }
 0x227   : > { %v675_v5 = vpop.f32.mrf.mxu2 }
 0x228   : > { %v676_v6 = vadd.f32 %v836_v4, %v675_v5 }
 0x22a   : > { %699 = vst [vmem:[%s334_s16] sm:$0xff] %v676_v6 }
 0x22f   : > { %v678_v7 = vpop.f32.mrf.mxu2 }
 0x230   : > { %v679_v8 = vadd.f32 %v836_v4, %v678_v7 }
 0x232   : > { %700 = vst [vmem:[%s334_s16 + $0x8] sm:$0xff] %v679_v8 }
 0x237   : > { %v681_v9 = vpop.f32.mrf.mxu2 }
 0x238   : > { %v682_v10 = vadd.f32 %v836_v4, %v681_v9 }
 0x23a   : > { %701 = vst [vmem:[%s334_s16 + $0x10] sm:$0xff] %v682_v10 }
 0x23e   : > { %v693_v11 = vpop.f32.mrf.mxu3 }
 0x23f   : > { %v694_v12 = vadd.f32 %v836_v4, %v693_v11  ;;  %v684_v13 = vpop.f32.mrf.mxu2 }
 0x240   : > { %v685_v14 = vadd.f32 %v836_v4, %v684_v13 }
 0x241   : > { %705 = vst [vmem:[%s334_s16 + $0x30] sm:$0xff] %v694_v12 }
 0x242   : > { %702 = vst [vmem:[%s334_s16 + $0x18] sm:$0xff] %v685_v14 }
 0x248   : > { %v687_v15 = vpop.f32.mrf.mxu2 }
 0x249   : > { %v688_v16 = vadd.f32 %v836_v4, %v687_v15 }
 0x24b   : > { %703 = vst [vmem:[%s334_s16 + $0x20] sm:$0xff] %v688_v16 }
 0x24d   : > { %v696_v17 = vpop.f32.mrf.mxu3 }
 0x24e   : > { %v697_v18 = vadd.f32 %v836_v4, %v696_v17 }
 0x250   : > { %706 = vst [vmem:[%s334_s16 + $0x38] sm:$0xff] %v697_v18  ;;  %v690_v19 = vpop.f32.mrf.mxu2 }
 0x251   : > { %v691_v20 = vadd.f32 %v836_v4, %v690_v19 }
 0x253   : > { %704 = vst [vmem:[%s334_s16 + $0x28] sm:$0xff] %v691_v20 }
 0x254 PF: > { %s19_s30 = sadd.s32 1, %s891_s30  }
 0x255   : > { %p16_p4 = scmp.ge.s32.totalorder %s19_s30, 6  }
 0x257   :  { %18 = sbr.rel (!%p16_p4) target bundleno = 1 (0x1), region = 86 }

</bundles_post_ra>
